<compile_context>
chip_gen: v5e
topology: v5e:2x2
jax: 0.10.0
libtpu: 0.0.40
codegen_flags: <defaults>
</compile_context>

<pallas_src>
import functools

import jax
import jax.numpy as jnp
from jax import lax
from jax.experimental import pallas as pl
from jax.experimental.pallas import tpu as pltpu


# ---------------------------------------------------------------------------
# In-kernel helpers
# ---------------------------------------------------------------------------
def _elu(x):
    # ELU(alpha=1): x if x > 0 else exp(x) - 1. Clamp the exp argument so the
    # not-taken branch never overflows.
    return jnp.where(x > 0, x, jnp.exp(jnp.minimum(x, 0.0)) - 1.0)


# ---------------------------------------------------------------------------
# Pallas kernel: whole MLP forward in a single invocation
# ---------------------------------------------------------------------------
def mlp_kernel(x_ref, w1_ref, b1_ref, gamma_ref, beta_ref, w2_ref, b2_ref,
               out_ref, *, eps):
    x = x_ref[...]                                                # (R, n_in)

    # Linear1 + ELU  (single MXU matmul, full K)
    h = jnp.dot(x, w1_ref[...], preferred_element_type=jnp.float32)
    h = _elu(h + b1_ref[...])                                     # (R, n_hid)

    # BatchNorm1d over the flattened (B*N) row axis (training-mode batch
    # statistics, biased variance, like torch.nn.BatchNorm1d in forward).
    mean = jnp.mean(h, axis=0, keepdims=True)                     # (1, n_hid)
    centered = h - mean
    var = jnp.mean(centered * centered, axis=0, keepdims=True)    # (1, n_hid)
    h_bn = centered * lax.rsqrt(var + eps)                        # EUP rsqrt
    h_bn = gamma_ref[...] * h_bn + beta_ref[...]

    # TODO(synk): F.dropout is stochastic; applied as identity (eval-mode
    # semantics) so the kernel is deterministic. Running-stat buffers of the
    # BatchNorm are not updated (inference of the forward math only).

    # Linear2 + ELU  (single MXU matmul, lane-dense 128-wide output store)
    y = jnp.dot(h_bn, w2_ref[...], preferred_element_type=jnp.float32)
    out_ref[...] = _elu(y + b2_ref[...])                          # (R, n_out)


# ---------------------------------------------------------------------------
# Wrapper: parameter layout + pallas_call glue
# ---------------------------------------------------------------------------
def mlp_pallas(inputs, params, *, eps=1e-5):
    B, N, n_in = inputs.shape
    n_hid = params["w1"].shape[0]
    n_out = params["w2"].shape[0]
    # The reference module applies BatchNorm1d(n_out) to the n_hid-wide hidden
    # activation, which is only well-defined when n_hid == n_out (as in GRELEN).
    assert n_hid == n_out, "MLP requires n_hid == n_out (BatchNorm1d(n_out))"
    R = B * N

    x = inputs.reshape(R, n_in).astype(jnp.float32)               # batch folded
    w1 = params["w1"].T.astype(jnp.float32)                       # (n_in, n_hid)
    b1 = params["b1"].reshape(1, n_hid).astype(jnp.float32)
    gamma = params["bn_gamma"].reshape(1, n_hid).astype(jnp.float32)
    beta = params["bn_beta"].reshape(1, n_hid).astype(jnp.float32)
    w2 = params["w2"].T.astype(jnp.float32)                       # (n_hid, n_out)
    b2 = params["b2"].reshape(1, n_out).astype(jnp.float32)

    vmem = pl.BlockSpec(memory_space=pltpu.MemorySpace.VMEM)
    out = pl.pallas_call(
        functools.partial(mlp_kernel, eps=eps),
        out_shape=jax.ShapeDtypeStruct((R, n_out), jnp.float32),
        in_specs=[vmem] * 7,
        out_specs=vmem,
    )(x, w1, b1, gamma, beta, w2, b2)

    return out.reshape(B, N, n_out)


# ---------------------------------------------------------------------------
# Pure-JAX reference (mirrors the PyTorch forward line-by-line)
# ---------------------------------------------------------------------------
def mlp_ref(inputs, params, *, eps=1e-5):
    B, N, _ = inputs.shape
    h = jax.nn.elu(inputs @ params["w1"].T + params["b1"])        # linear1 + elu
    h2 = h.reshape(B * N, -1)                                     # batch_norm view
    mean = jnp.mean(h2, axis=0)
    var = jnp.mean((h2 - mean) ** 2, axis=0)                      # biased var
    h_bn = (h2 - mean) / jnp.sqrt(var + eps)
    h_bn = params["bn_gamma"] * h_bn + params["bn_beta"]
    h_bn = h_bn.reshape(B, N, -1)
    # dropout: identity (deterministic / eval semantics)
    y = jax.nn.elu(h_bn @ params["w2"].T + params["b2"])          # linear2 + elu
    return y


# ---------------------------------------------------------------------------
# Main
# ---------------------------------------------------------------------------
if __name__ == "__main__":
    B = 2          # batch
    N = 16         # tokens / node pairs per batch element
    n_in = 64
    n_hid = 128
    n_out = 128    # == n_hid, as required by the module's BatchNorm1d(n_out)

    key = jax.random.PRNGKey(0)
    k_x, k_w1, k_w2 = jax.random.split(key, 3)

    inputs = jax.random.normal(k_x, (B, N, n_in), jnp.float32)

    def xavier_normal(k, out_dim, in_dim):
        std = (2.0 / (in_dim + out_dim)) ** 0.5
        return std * jax.random.normal(k, (out_dim, in_dim), jnp.float32)

    params = {
        "w1": xavier_normal(k_w1, n_hid, n_in),
        "b1": jnp.full((n_hid,), 0.1, jnp.float32),
        "w2": xavier_normal(k_w2, n_out, n_hid),
        "b2": jnp.full((n_out,), 0.1, jnp.float32),
        "bn_gamma": jnp.ones((n_hid,), jnp.float32),   # BatchNorm weight.fill_(1)
        "bn_beta": jnp.zeros((n_hid,), jnp.float32),   # BatchNorm bias.zero_()
    }

    out = mlp_pallas(inputs, params)
    out = jax.block_until_ready(out)

    ref = mlp_ref(inputs, params)
    ref = jax.block_until_ready(ref)

    assert out.shape == (B, N, n_out)
    assert bool(jnp.all(jnp.isfinite(out)))
    # Loose tolerance covers MXU vs XLA matmul rounding differences.
    assert bool(jnp.allclose(out, ref, atol=1e-2, rtol=1e-2)), \
        f"max abs diff {float(jnp.max(jnp.abs(out - ref)))}"

    print("KERNEL_OK")
</pallas_src>

<mosaic_0001>
module attributes {stable_mosaic.version = 11 : i64} {
  func.func @mlp_kernel(%arg0: memref<32x64xf32, #tpu.memory_space<vmem>>, %arg1: memref<64x128xf32, #tpu.memory_space<vmem>>, %arg2: memref<1x128xf32, #tpu.memory_space<vmem>>, %arg3: memref<1x128xf32, #tpu.memory_space<vmem>>, %arg4: memref<1x128xf32, #tpu.memory_space<vmem>>, %arg5: memref<128x128xf32, #tpu.memory_space<vmem>>, %arg6: memref<1x128xf32, #tpu.memory_space<vmem>>, %arg7: memref<32x128xf32, #tpu.memory_space<vmem>>) attributes {dimension_semantics = [], scalar_prefetch = 0 : i64, scratch_operands = 0 : i64, tpu.core_type = #tpu.core_type<tc>} {
    %c0 = arith.constant 0 : index
    %c0_0 = arith.constant 0 : index
    %0 = vector.load %arg0[%c0, %c0_0] : memref<32x64xf32, #tpu.memory_space<vmem>>, vector<32x64xf32>
    %c0_1 = arith.constant 0 : index
    %c0_2 = arith.constant 0 : index
    %1 = vector.load %arg1[%c0_1, %c0_2] : memref<64x128xf32, #tpu.memory_space<vmem>>, vector<64x128xf32>
    %cst = arith.constant dense<0.000000e+00> : vector<32x128xf32>
    %2 = tpu.matmul %0, %1, %cst {dimension_numbers = #tpu.dot_dimension_numbers<[1], [0], [0], [1], [0, 0, 1, 1], [], []>} : vector<32x64xf32>, vector<64x128xf32>, vector<32x128xf32> -> vector<32x128xf32>
    %c0_3 = arith.constant 0 : index
    %c0_4 = arith.constant 0 : index
    %3 = vector.load %arg2[%c0_3, %c0_4] : memref<1x128xf32, #tpu.memory_space<vmem>>, vector<1x128xf32>
    %4 = vector.broadcast %3 : vector<1x128xf32> to vector<32x128xf32>
    %5 = arith.addf %2, %4 : vector<32x128xf32>
    %cst_5 = arith.constant 0.000000e+00 : f32
    %6 = vector.broadcast %cst_5 : f32 to vector<32x128xf32>
    %7 = arith.cmpf ogt, %5, %6 : vector<32x128xf32>
    %cst_6 = arith.constant 0.000000e+00 : f32
    %8 = vector.broadcast %cst_6 : f32 to vector<32x128xf32>
    %9 = arith.minimumf %5, %8 : vector<32x128xf32>
    %10 = math.exp %9 : vector<32x128xf32>
    %cst_7 = arith.constant 1.000000e+00 : f32
    %11 = vector.broadcast %cst_7 : f32 to vector<32x128xf32>
    %12 = arith.subf %10, %11 : vector<32x128xf32>
    %13 = arith.select %7, %5, %12 : vector<32x128xi1>, vector<32x128xf32>
    %cst_8 = arith.constant dense<0.000000e+00> : vector<128xf32>
    %14 = vector.multi_reduction <add>, %13, %cst_8 [0] : vector<32x128xf32> to vector<128xf32>
    %15 = vector.shape_cast %14 : vector<128xf32> to vector<1x128xf32>
    %cst_9 = arith.constant 3.200000e+01 : f32
    %16 = vector.broadcast %cst_9 : f32 to vector<1x128xf32>
    %17 = arith.divf %15, %16 : vector<1x128xf32>
    %18 = vector.broadcast %17 : vector<1x128xf32> to vector<32x128xf32>
    %19 = arith.subf %13, %18 : vector<32x128xf32>
    %20 = arith.mulf %19, %19 : vector<32x128xf32>
    %cst_10 = arith.constant dense<0.000000e+00> : vector<128xf32>
    %21 = vector.multi_reduction <add>, %20, %cst_10 [0] : vector<32x128xf32> to vector<128xf32>
    %22 = vector.shape_cast %21 : vector<128xf32> to vector<1x128xf32>
    %cst_11 = arith.constant 3.200000e+01 : f32
    %23 = vector.broadcast %cst_11 : f32 to vector<1x128xf32>
    %24 = arith.divf %22, %23 : vector<1x128xf32>
    %cst_12 = arith.constant 9.99999974E-6 : f32
    %25 = vector.broadcast %cst_12 : f32 to vector<1x128xf32>
    %26 = arith.addf %24, %25 : vector<1x128xf32>
    %27 = math.rsqrt %26 : vector<1x128xf32>
    %28 = vector.broadcast %27 : vector<1x128xf32> to vector<32x128xf32>
    %29 = arith.mulf %19, %28 : vector<32x128xf32>
    %c0_13 = arith.constant 0 : index
    %c0_14 = arith.constant 0 : index
    %30 = vector.load %arg3[%c0_13, %c0_14] : memref<1x128xf32, #tpu.memory_space<vmem>>, vector<1x128xf32>
    %31 = vector.broadcast %30 : vector<1x128xf32> to vector<32x128xf32>
    %32 = arith.mulf %31, %29 : vector<32x128xf32>
    %c0_15 = arith.constant 0 : index
    %c0_16 = arith.constant 0 : index
    %33 = vector.load %arg4[%c0_15, %c0_16] : memref<1x128xf32, #tpu.memory_space<vmem>>, vector<1x128xf32>
    %34 = vector.broadcast %33 : vector<1x128xf32> to vector<32x128xf32>
    %35 = arith.addf %32, %34 : vector<32x128xf32>
    %c0_17 = arith.constant 0 : index
    %c0_18 = arith.constant 0 : index
    %36 = vector.load %arg5[%c0_17, %c0_18] : memref<128x128xf32, #tpu.memory_space<vmem>>, vector<128x128xf32>
    %cst_19 = arith.constant dense<0.000000e+00> : vector<32x128xf32>
    %37 = tpu.matmul %35, %36, %cst_19 {dimension_numbers = #tpu.dot_dimension_numbers<[1], [0], [0], [1], [0, 0, 1, 1], [], []>} : vector<32x128xf32>, vector<128x128xf32>, vector<32x128xf32> -> vector<32x128xf32>
    %c0_20 = arith.constant 0 : index
    %c0_21 = arith.constant 0 : index
    %38 = vector.load %arg6[%c0_20, %c0_21] : memref<1x128xf32, #tpu.memory_space<vmem>>, vector<1x128xf32>
    %39 = vector.broadcast %38 : vector<1x128xf32> to vector<32x128xf32>
    %40 = arith.addf %37, %39 : vector<32x128xf32>
    %cst_22 = arith.constant 0.000000e+00 : f32
    %41 = vector.broadcast %cst_22 : f32 to vector<32x128xf32>
    %42 = arith.cmpf ogt, %40, %41 : vector<32x128xf32>
    %cst_23 = arith.constant 0.000000e+00 : f32
    %43 = vector.broadcast %cst_23 : f32 to vector<32x128xf32>
    %44 = arith.minimumf %40, %43 : vector<32x128xf32>
    %45 = math.exp %44 : vector<32x128xf32>
    %cst_24 = arith.constant 1.000000e+00 : f32
    %46 = vector.broadcast %cst_24 : f32 to vector<32x128xf32>
    %47 = arith.subf %45, %46 : vector<32x128xf32>
    %48 = arith.select %42, %40, %47 : vector<32x128xi1>, vector<32x128xf32>
    %c0_25 = arith.constant 0 : index
    %c0_26 = arith.constant 0 : index
    %49 = vector.load %arg7[%c0_25, %c0_26] : memref<32x128xf32, #tpu.memory_space<vmem>>, vector<32x128xf32>
    tpu.vector_store %arg7[%c0_25, %c0_26], %48 {strides = array<i32>} : memref<32x128xf32, #tpu.memory_space<vmem>>, vector<32x128xf32>,
    return
  }
}

</mosaic_0001>

<bundles_post_ra>
// kernel: tpu_custom_call.1
= control target key start
LH: loop header
LB: loop body
LE: loop exit
PB: predicated region body
PF: predicated region fallthrough
CT: control target
= control target key end

     0   :  { %12 = vsyncpa [#allocation3], 0  ;;  %s598_s0 = inlined_call_operand.hbm [shape: f32[32,64], index: 0, kind: input, shape index: {}]   ;;  %s599_s1 = inlined_call_operand.hbm [shape: f32[64,128], index: 1, kind: input, shape index: {}]   ;;  %s600_s2 = inlined_call_operand.vmem [shape: f32[1,128], index: 2, kind: input, shape index: {}]   ;;  %s601_s3 = inlined_call_operand.vmem [shape: f32[1,128], index: 3, kind: input, shape index: {}]   ;;  %s602_s4 = inlined_call_operand.vmem [shape: f32[1,128], index: 4, kind: input, shape index: {}]   ;;  %s603_s5 = inlined_call_operand.hbm [shape: f32[128,128], index: 5, kind: input, shape index: {}]   ;;  %s604_s6 = inlined_call_operand.vmem [shape: f32[1,128], index: 6, kind: input, shape index: {}]   ;;  %s605_s7 = inlined_call_operand.hbm [shape: f32[32,128], index: 7, kind: output, shape index: {}]  }
   0x1   :  { %13 = vsyncpa [#allocation6], 0 }
   0x2   :  { %14 = vsyncpa [#allocation4], 0  ;;  %s32_s26 = sshll.u32 %s599_s1, 4  ;;  %s496_s27 = smov [#allocation5]   ;;  %s33_s26 = int_to_ptr.hbm [resolvable:$true] %s32_s26 }
   0x3   :  { %s34_s28 = sshll.u32 %s496_s27, 4  ;;  %s19_s8 = sshll.u32 %s598_s0, 4  ;;  %s35_s28 = int_to_ptr.vmem [resolvable:$true] %s34_s28  ;;  %s20_s8 = int_to_ptr.hbm [resolvable:$true] %s19_s8 }
   0x4   :  { %s497_s9 = smov 128   ;;  %s498_s10 = smov 8  }
   0x5   :  { %40 = dma.hbm_to_vmem [thread:$0]  %s33_s26, 1024, %s35_s28, [#allocation6], %s497_s9, %s497_s9, %s498_s10  }
   0x6   :  { %s499_s11 = smov [#allocation2]   ;;  %s51_s1 = sshll.u32 %s603_s5, 4  ;;  %s52_s1 = int_to_ptr.hbm [resolvable:$true] %s51_s1 }
   0x7   :  { %s21_s12 = sshll.u32 %s499_s11, 4  ;;  %s500_s0 = smov [#allocation7]   ;;  %s22_s12 = int_to_ptr.vmem [resolvable:$true] %s21_s12 }
   0x8   :  { %27 = dma.hbm_to_vmem [thread:$0]  %s20_s8, 512, %s22_s12, [#allocation3], %s497_s9, %s497_s9, %s498_s10  }
   0x9   :  { %s53_s15 = sshll.u32 %s500_s0, 4  ;;  %s54_s15 = int_to_ptr.vmem [resolvable:$true] %s53_s15 }
   0xa   :  { %59 = dma.hbm_to_vmem [thread:$0]  %s52_s1, 2048, %s54_s15, [#allocation6], %s497_s9, %s497_s9, %s498_s10  }
   0xb   :  { %490 = dma.done.wait [#allocation3], 512  }
   0xc   :  { %491 = vsyncadd [#allocation3], 4294966784 }
   0xd   :  { %492 = dma.done.wait [#allocation6], 3072  }
   0xe   :  { %493 = vsyncadd [#allocation6], 4294964224  ;;  %v85_v0 = vld [vmem:[#allocation5 + $0x38] sm:$0xff]  ;;  %v84_v1 = vld [vmem:[#allocation5 + $0x30] sm:$0xff]  ;;  %vm90_vm0 = vcmask 523264   ;;  %v501_v29 = vmov 32.0  }
   0xf   :  { %111 = vmatpush.msra.mxu0 %v85_v0  ;;  %v83_v2 = vld [vmem:[#allocation5 + $0x28] sm:$0xff]  ;;  %v82_v3 = vld [vmem:[#allocation5 + $0x20] sm:$0xff]  ;;  %v81_v4 = vld [vmem:[#allocation5 + $0x18] sm:$0xff]  ;;  %s305_s23 = sshll.u32 %s605_s7, 4  ;;  %s306_s23 = int_to_ptr.hbm [resolvable:$true] %s305_s23 }
  0x10   :  { %v80_v5 = vld [vmem:[#allocation5 + $0x10] sm:$0xff]  ;;  %v79_v6 = vld [vmem:[#allocation5 + $0x8] sm:$0xff]  ;;  %v78_v7 = vld [vmem:[#allocation5] sm:$0xff] }
  0x11   :  { %112 = vmatpush.msra.mxu0 %v84_v1  ;;  %v74_v8 = vld [vmem:[#allocation2] sm:$0xff]  ;;  %v75_v9 = vld [vmem:[#allocation2 + $0x8] sm:$0xff]  ;;  %v76_v10 = vld [vmem:[#allocation2 + $0x10] sm:$0xff] }
  0x12   :  { %v77_v11 = vld [vmem:[#allocation2 + $0x18] sm:$0xff]  ;;  %v370_v13 = vld [vmem:[%s600_s2] ss:$0 sm:$0xff]  ;;  %v236_v31 = vld [vmem:[#allocation7 + $0x70] sm:$0xff] }
  0x13   :  { %113 = vmatpush.msra.mxu0 %v83_v2  ;;  %v237_v30 = vld [vmem:[#allocation7 + $0x78] sm:$0xff]  ;;  %v235_v35 = vld [vmem:[#allocation7 + $0x68] sm:$0xff]  ;;  %v234_v37 = vld [vmem:[#allocation7 + $0x60] sm:$0xff] }
  0x14   :  { %242 = vmatpush.msra.mxu1 %v237_v30  ;;  %331 = vmatpush.msra.mxu2 %v237_v30  ;;  %v233_v41 = vld [vmem:[#allocation7 + $0x58] sm:$0xff]  ;;  %v232_v43 = vld [vmem:[#allocation7 + $0x50] sm:$0xff]  ;;  %v231_v49 = vld [vmem:[#allocation7 + $0x48] sm:$0xff] }
  0x15   :  { %114 = vmatpush.msra.mxu0 %v82_v3  ;;  %332 = vmatpush.msra.mxu3 %v237_v30  ;;  %v230_v52 = vld [vmem:[#allocation7 + $0x40] sm:$0xff]  ;;  %v229_v56 = vld [vmem:[#allocation7 + $0x38] sm:$0xff]  ;;  %v228_v58 = vld [vmem:[#allocation7 + $0x30] sm:$0xff] }
  0x16   :  { %243 = vmatpush.msra.mxu1 %v236_v31  ;;  %333 = vmatpush.msra.mxu2 %v236_v31  ;;  %v227_v61 = vld [vmem:[#allocation7 + $0x28] sm:$0xff]  ;;  %v226_v63 = vld [vmem:[#allocation7 + $0x20] sm:$0xff]  ;;  %v225_v2 = vld [vmem:[#allocation7 + $0x18] sm:$0xff] }
  0x17   :  { %115 = vmatpush.msra.mxu0 %v81_v4  ;;  %334 = vmatpush.msra.mxu3 %v236_v31  ;;  %v224_v4 = vld [vmem:[#allocation7 + $0x10] sm:$0xff] }
  0x18   :  { %244 = vmatpush.msra.mxu1 %v235_v35  ;;  %335 = vmatpush.msra.mxu2 %v235_v35 }
  0x19   :  { %116 = vmatpush.msra.mxu0 %v80_v5  ;;  %336 = vmatpush.msra.mxu3 %v235_v35  ;;  %v371_v35 = vld [vmem:[%s601_s3] ss:$0 sm:$0xff] }
  0x1a   :  { %245 = vmatpush.msra.mxu1 %v234_v37  ;;  %337 = vmatpush.msra.mxu2 %v234_v37 }
  0x1b   :  { %117 = vmatpush.msra.mxu0 %v79_v6  ;;  %338 = vmatpush.msra.mxu3 %v234_v37 }
  0x1c   :  { %246 = vmatpush.msra.mxu1 %v233_v41  ;;  %339 = vmatpush.msra.mxu2 %v233_v41 }
  0x1d   :  { %118 = vmatpush.msra.mxu0 %v78_v7  ;;  %340 = vmatpush.msra.mxu3 %v233_v41  ;;  %v223_v7 = vld [vmem:[#allocation7 + $0x8] sm:$0xff] }
  0x1e   :  { %319 = vmatmul.msk.f32.vlgmr.msra.gmra.mxu0 %vm90_vm0, %v74_v8  ;;  %247 = vmatpush.msra.mxu1 %v232_v43 }
  0x1f   :  { %341 = vmatpush.msra.mxu2 %v232_v43  ;;  %342 = vmatpush.msra.mxu3 %v232_v43 }
  0x20   :  { %248 = vmatpush.msra.mxu1 %v231_v49 }
  0x21   :  { %343 = vmatpush.msra.mxu2 %v231_v49  ;;  %344 = vmatpush.msra.mxu3 %v231_v49 }
  0x22   :  { %249 = vmatpush.msra.mxu1 %v230_v52 }
  0x23   :  { %345 = vmatpush.msra.mxu2 %v230_v52  ;;  %346 = vmatpush.msra.mxu3 %v230_v52 }
  0x24   :  { %250 = vmatpush.msra.mxu1 %v229_v56 }
  0x25   :  { %347 = vmatpush.msra.mxu2 %v229_v56  ;;  %348 = vmatpush.msra.mxu3 %v229_v56 }
  0x26   :  { %320 = vmatmul.msk.f32.gmra.mxu0 %vm90_vm0, %v75_v9  ;;  %251 = vmatpush.msra.mxu1 %v228_v58  ;;  %v222_v9 = vld [vmem:[#allocation7] sm:$0xff] }
  0x27   :  { %349 = vmatpush.msra.mxu2 %v228_v58  ;;  %350 = vmatpush.msra.mxu3 %v228_v58 }
  0x28   :  { %252 = vmatpush.msra.mxu1 %v227_v61 }
  0x29   :  { %351 = vmatpush.msra.mxu2 %v227_v61  ;;  %352 = vmatpush.msra.mxu3 %v227_v61 }
  0x2a   :  { %253 = vmatpush.msra.mxu1 %v226_v63 }
  0x2b   :  { %353 = vmatpush.msra.mxu2 %v226_v63  ;;  %354 = vmatpush.msra.mxu3 %v226_v63 }
  0x2c   :  { %254 = vmatpush.msra.mxu1 %v225_v2 }
  0x2d   :  { %355 = vmatpush.msra.mxu2 %v225_v2  ;;  %356 = vmatpush.msra.mxu3 %v225_v2 }
  0x2e   :  { %321 = vmatmul.msk.f32.gmra.mxu0 %vm90_vm0, %v76_v10  ;;  %255 = vmatpush.msra.mxu1 %v224_v4 }
  0x2f   :  { %357 = vmatpush.msra.mxu2 %v224_v4  ;;  %358 = vmatpush.msra.mxu3 %v224_v4 }
  0x30   :  { %256 = vmatpush.msra.mxu1 %v223_v7 }
  0x31   :  { %359 = vmatpush.msra.mxu2 %v223_v7  ;;  %360 = vmatpush.msra.mxu3 %v223_v7 }
  0x32   :  { %257 = vmatpush.msra.mxu1 %v222_v9 }
  0x33   :  { %361 = vmatpush.msra.mxu2 %v222_v9  ;;  %362 = vmatpush.msra.mxu3 %v222_v9 }
  0x36   :  { %322 = vmatmul.msk.f32.gmra.mxu0 %vm90_vm0, %v77_v11 }
  0x9b   :  { %v120_v12 = vpop.f32.mrf.mxu0 }
  0x9c   :  { %v121_v16 = vadd.f32 %v370_v13, %v120_v12 }
  0x9e   :  { %v136_v18 = vmin.f32 %v121_v16, 0.0  ;;  %vm132_vm2 = vcmp.gt.f32.partialorder %v121_v16, 0.0 }
  0xa0   :  { %v140_v22 = vmul.f32 1.442695, %v136_v18 }
  0xa3   :  { %v123_v14 = vpop.f32.mrf.mxu0 }
  0xa4   :  { %v124_v15 = vadd.f32 %v370_v13, %v123_v14 }
  0xa6   :  { %v137_v17 = vmin.f32 %v124_v15, 0.0  ;;  %vm133_vm1 = vcmp.gt.f32.partialorder %v124_v15, 0.0 }
  0xa8   :  { %v142_v20 = vmul.f32 1.442695, %v137_v17 }
  0xaa   :  { %374 = vpow2.f32 %v142_v20 }
  0xab   :  { %v126_v19 = vpop.f32.mrf.mxu0  ;;  %376 = vpow2.f32 %v140_v22 }
  0xac   :  { %v127_v21 = vadd.f32 %v370_v13, %v126_v19 }
  0xae   :  { %v138_v23 = vmin.f32 %v127_v21, 0.0  ;;  %vm134_vm3 = vcmp.gt.f32.partialorder %v127_v21, 0.0 }
  0xb0   :  { %v144_v24 = vmul.f32 1.442695, %v138_v23  ;;  %v375_v27 = vpop.eup %374 }
  0xb1   :  { %v377_v32 = vpop.eup %376  ;;  %v324_v36 = vadd.f32 -1.0, %v375_v27 }
  0xb2   :  { %378 = vpow2.f32 %v144_v24  ;;  %v323_v38 = vadd.f32 -1.0, %v377_v32 }
  0xb3   :  { %v129_v25 = vpop.f32.mrf.mxu0  ;;  %380 = vrcp.f32 %v501_v29  ;;  %v566_v42 = vsel %vm133_vm1, %v124_v15, %v324_v36 }
  0xb4   :  { %v130_v26 = vadd.f32 %v370_v13, %v129_v25  ;;  %v568_v44 = vsel %vm132_vm2, %v121_v16, %v323_v38  ;;  %v372_v38 = vld [vmem:[%s602_s4] ss:$0 sm:$0xff]  ;;  %s502_s4 = smov [#allocation8]  }
  0xb5   :  { %v156_v48 = vadd.f32 %v566_v42, %v568_v44 }
  0xb6   :  { %v139_v28 = vmin.f32 %v130_v26, 0.0  ;;  %vm135_vm4 = vcmp.gt.f32.partialorder %v130_v26, 0.0 }
  0xb8   :  { %v379_v33 = vpop.eup %378  ;;  %v146_v34 = vmul.f32 1.442695, %v139_v28 }
  0xb9   :  { %v325_v39 = vadd.f32 -1.0, %v379_v33  ;;  %v564_v40 = vpop.eup %380 }
  0xba   :  { %382 = vpow2.f32 %v146_v34  ;;  %v166_v46 = vmul.f32 32.0, %v564_v40  ;;  %vm170_vm5 = vweird.f32 %v564_v40 }
  0xbb   :  { %v570_v45 = vsel %vm134_vm3, %v127_v21, %v325_v39 }
  0xbc   :  { %v157_v51 = vadd.f32 %v156_v48, %v570_v45  ;;  %v167_v54 = vsub.f32 1.0, %v166_v46 }
  0xbe   :  { %v168_v59 = vmul.f32 %v564_v40, %v167_v54 }
  0xc0   :  { %v383_v47 = vpop.eup %382  ;;  %v169_v0 = vadd.f32 %v564_v40, %v168_v59 }
  0xc1   :  { %v326_v50 = vadd.f32 -1.0, %v383_v47 }
  0xc2   :  { %v171_v5 = vsel %vm170_vm5, %v564_v40, %v169_v0 }
  0xc3   :  { %v155_v53 = vsel %vm135_vm4, %v130_v26, %v326_v50  ;;  %v373_v50 = vld [vmem:[%s604_s6] ss:$0 sm:$0xff]  ;;  %s303_s6 = sshll.u32 %s502_s4, 4  ;;  %s304_s6 = int_to_ptr.vmem [resolvable:$true] %s303_s6 }
  0xc4   :  { %v158_v55 = vadd.f32 %v157_v51, %v155_v53 }
  0xc6   :  { %v159_v57 = vrot.slane %v158_v55, 4 }
  0xc8   :  { %v160_v60 = vadd.f32 %v159_v57, %v158_v55 }
  0xca   :  { %v161_v62 = vrot.slane %v160_v60, 2 }
  0xcc   :  { %v162_v1 = vadd.f32 %v161_v62, %v160_v60 }
  0xce   :  { %v163_v3 = vrot.slane %v162_v1, 1 }
  0xd0   :  { %v164_v6 = vadd.f32 %v163_v3, %v162_v1 }
  0xd2   :  { %v172_v8 = vmul.f32 %v171_v5, %v164_v6 }
  0xd4   :  { %v173_v10 = vsub.f32 %v568_v44, %v172_v8  ;;  %v174_v11 = vsub.f32 %v566_v42, %v172_v8  ;;  %v175_v12 = vsub.f32 %v570_v45, %v172_v8  ;;  %v176_v13 = vsub.f32 %v155_v53, %v172_v8 }
  0xd6   :  { %v177_v14 = vmul.f32 %v173_v10, %v173_v10  ;;  %v178_v15 = vmul.f32 %v174_v11, %v174_v11  ;;  %v179_v16 = vmul.f32 %v175_v12, %v175_v12  ;;  %v180_v18 = vmul.f32 %v176_v13, %v176_v13 }
  0xd8   :  { %v181_v17 = vadd.f32 %v178_v15, %v177_v14 }
  0xda   :  { %v182_v19 = vadd.f32 %v181_v17, %v179_v16 }
  0xdc   :  { %v183_v20 = vadd.f32 %v182_v19, %v180_v18 }
  0xde   :  { %v184_v21 = vrot.slane %v183_v20, 4 }
  0xe0   :  { %v185_v22 = vadd.f32 %v184_v21, %v183_v20 }
  0xe2   :  { %v186_v23 = vrot.slane %v185_v22, 2 }
  0xe4   :  { %v187_v24 = vadd.f32 %v186_v23, %v185_v22 }
  0xe6   :  { %v188_v25 = vrot.slane %v187_v24, 1 }
  0xe8   :  { %v189_v26 = vadd.f32 %v188_v25, %v187_v24 }
  0xea   :  { %v190_v27 = vmul.f32 %v189_v26, %v171_v5 }
  0xec   :  { %v191_v28 = vadd.f32 1e-05, %v190_v27 }
  0xee   :  { %384 = vrsqrt.f32 %v191_v28  ;;  %vm198_vm7 = vweird.f32 %v191_v28 }
  0xf4   :  { %v385_v29 = vpop.eup %384 }
  0xf5   :  { %v193_v30 = vmul.f32 %v385_v29, %v191_v28  ;;  %vm199_vm6 = vweird.f32 %v385_v29 }
  0xf6   :  { %vm200_vm8 = vmor %vm198_vm7, %vm199_vm6 }
  0xf7   :  { %v194_v31 = vmul.f32 %v385_v29, %v193_v30 }
  0xf9   :  { %v195_v32 = vmul.f32 0.5, %v194_v31 }
  0xfb   :  { %v196_v33 = vsub.f32 1.5, %v195_v32 }
  0xfd   :  { %v197_v34 = vmul.f32 %v385_v29, %v196_v33 }
  0xff   :  { %v201_v36 = vsel %vm200_vm8, %v385_v29, %v197_v34 }
 0x100   :  { %v202_v37 = vmul.f32 %v201_v36, %v173_v10  ;;  %v203_v39 = vmul.f32 %v201_v36, %v174_v11  ;;  %v204_v40 = vmul.f32 %v201_v36, %v175_v12  ;;  %v205_v47 = vmul.f32 %v201_v36, %v176_v13 }
 0x102   :  { %v210_v41 = vmul.f32 %v371_v35, %v202_v37  ;;  %v211_v42 = vmul.f32 %v371_v35, %v203_v39  ;;  %v212_v43 = vmul.f32 %v371_v35, %v204_v40  ;;  %v213_v48 = vmul.f32 %v371_v35, %v205_v47 }
 0x104   :  { %v218_v44 = vadd.f32 %v372_v38, %v210_v41  ;;  %v219_v45 = vadd.f32 %v372_v38, %v211_v42  ;;  %v220_v46 = vadd.f32 %v372_v38, %v212_v43  ;;  %v221_v49 = vadd.f32 %v372_v38, %v213_v48 }
 0x106   :  { %258 = vmatmul.f32.vlgmr.msra.gmra.mxu1 %v218_v44  ;;  %261 = vmatmul.f32.vlgmr.msra.gmra.mxu2 %v219_v45 }
 0x107   :  { %264 = vmatmul.f32.vlgmr.msra.gmra.mxu3 %v220_v46 }
 0x10f   :  { %267 = vmatmul.f32.gmra.mxu3 %v221_v49 }
 0x183   :  { %v259_v51 = vpop.f32.mrf.mxu1 }
 0x184   :  { %v260_v52 = vadd.f32 %v373_v50, %v259_v51 }
 0x186   :  { %v275_v53 = vmin.f32 %v260_v52, 0.0  ;;  %vm271_vm9 = vcmp.gt.f32.partialorder %v260_v52, 0.0 }
 0x188   :  { %v279_v54 = vmul.f32 1.442695, %v275_v53 }
 0x189   :  { %v262_v55 = vpop.f32.mrf.mxu2 }
 0x18a   :  { %386 = vpow2.f32 %v279_v54  ;;  %v263_v56 = vadd.f32 %v373_v50, %v262_v55  ;;  %v265_v57 = vpop.f32.mrf.mxu3 }
 0x18b   :  { %v266_v58 = vadd.f32 %v373_v50, %v265_v57 }
 0x18c   :  { %v276_v59 = vmin.f32 %v263_v56, 0.0  ;;  %vm272_vm10 = vcmp.gt.f32.partialorder %v263_v56, 0.0 }
 0x18d   :  { %v277_v60 = vmin.f32 %v266_v58, 0.0  ;;  %vm273_vm11 = vcmp.gt.f32.partialorder %v266_v58, 0.0 }
 0x18e   :  { %v281_v61 = vmul.f32 1.442695, %v276_v59 }
 0x18f   :  { %v283_v62 = vmul.f32 1.442695, %v277_v60 }
 0x190   :  { %v387_v63 = vpop.eup %386  ;;  %388 = vpow2.f32 %v281_v61 }
 0x191   :  { %v327_v0 = vadd.f32 -1.0, %v387_v63  ;;  %390 = vpow2.f32 %v283_v62 }
 0x192   :  { %v268_v1 = vpop.f32.mrf.mxu3 }
 0x193   :  { %v291_v2 = vsel %vm271_vm9, %v260_v52, %v327_v0  ;;  %v269_v3 = vadd.f32 %v373_v50, %v268_v1 }
 0x194   :  { %295 = vst [vmem:[#allocation8] sm:$0xff] %v291_v2 }
 0x195   :  { %v278_v4 = vmin.f32 %v269_v3, 0.0  ;;  %vm274_vm12 = vcmp.gt.f32.partialorder %v269_v3, 0.0 }
 0x196   :  { %v389_v5 = vpop.eup %388 }
 0x197   :  { %v391_v6 = vpop.eup %390  ;;  %v328_v7 = vadd.f32 -1.0, %v389_v5  ;;  %v285_v8 = vmul.f32 1.442695, %v278_v4 }
 0x198   :  { %v329_v9 = vadd.f32 -1.0, %v391_v6 }
 0x199   :  { %v292_v10 = vsel %vm272_vm10, %v263_v56, %v328_v7  ;;  %392 = vpow2.f32 %v285_v8 }
 0x19a   :  { %296 = vst [vmem:[#allocation8 + $0x8] sm:$0xff] %v292_v10  ;;  %v293_v11 = vsel %vm273_vm11, %v266_v58, %v329_v9 }
 0x19b   :  { %297 = vst [vmem:[#allocation8 + $0x10] sm:$0xff] %v293_v11 }
 0x19f   :  { %v393_v12 = vpop.eup %392 }
 0x1a0   :  { %v330_v13 = vadd.f32 -1.0, %v393_v12 }
 0x1a2   :  { %v294_v14 = vsel %vm274_vm12, %v269_v3, %v330_v13 }
 0x1a3   :  { %298 = vst [vmem:[#allocation8 + $0x18] sm:$0xff] %v294_v14 }
 0x1a4   :  { %311 = dma.vmem_to_hbm [thread:$0]  %s304_s6, 512, %s306_s23, [#allocation4], %s497_s9, %s497_s9, %s498_s10  }
 0x1a5   :  { %494 = dma.done.wait [#allocation4], 512  }
 0x1a6   :  { %495 = vsyncadd [#allocation4], 4294966784 }
 0x1a7   :  { %316 = vsyncpa [#allocation3], 1 }
 0x1a8   :  { %317 = vsyncpa [#allocation6], 1 }
 0x1a9   :  { %318 = vsyncpa [#allocation4], 1 }

</bundles_post_ra>
